<compile_context>
chip_gen: v5e
topology: v5e:2x2
jax: 0.10.0
libtpu: 0.0.40
codegen_flags: <defaults>
</compile_context>

<pallas_src>
import jax
import jax.numpy as jnp
from jax.experimental import pallas as pl
from jax.experimental.pallas import tpu as pltpu


_LANE_CANDIDATES = (1024, 512, 256, 128)   # lane-dense widths (multiples of 128)
_TARGET_BLOCK_BYTES = 4 * 1024 * 1024      # ~4 MiB per block
_VMEM_LIMIT_BYTES = 32 * 1024 * 1024       # safe on v5e / v6e / v7x
_SMALL_BYTES = 2 * 1024 * 1024             # "just copy it in one block" cutoff


def _identity_kernel(x_ref, o_ref):
    # Straight copy of the current VMEM tile.
    o_ref[...] = x_ref[...]


def _pick_tile_rows(rows: int, lanes: int, itemsize: int) -> int:
    """Rows per block: ~4 MiB, multiple of 32 sublanes (safe for packed dtypes)."""
    target = max(32, _TARGET_BLOCK_BYTES // (lanes * itemsize))
    target = (target // 32) * 32
    if rows <= target:
        return rows            # full-extent rows block (always legal)
    return target


def _copy_2d(x2: jax.Array, tile_rows: int) -> jax.Array:
    rows, lanes = x2.shape
    grid = (pl.cdiv(rows, tile_rows),)
    return pl.pallas_call(
        _identity_kernel,
        out_shape=jax.ShapeDtypeStruct((rows, lanes), x2.dtype),
        grid_spec=pl.GridSpec(
            grid=grid,
            in_specs=[pl.BlockSpec((tile_rows, lanes), lambda i: (i, 0))],
            out_specs=pl.BlockSpec((tile_rows, lanes), lambda i: (i, 0)),
        ),
        # Output aliases the input buffer: no extra HBM allocation for an op
        # that computes nothing.
        input_output_aliases={0: 0},
        compiler_params=pltpu.CompilerParams(
            dimension_semantics=("parallel",),
            vmem_limit_bytes=_VMEM_LIMIT_BYTES,
        ),
    )(x2)


def identity_pallas(x: jax.Array) -> jax.Array:
    """Identity forward pass implemented as a Pallas TPU kernel."""
    orig_shape = x.shape
    flat = x.reshape(-1)
    n = flat.shape[0]
    if n == 0:
        # Nothing to copy.
        return flat.reshape(orig_shape)

    itemsize = jnp.dtype(x.dtype).itemsize

    # Largest lane-dense width that exactly divides the element count.
    lanes = next((c for c in _LANE_CANDIDATES if n % c == 0), None)

    if lanes is not None:
        rows = n // lanes
        tile_rows = _pick_tile_rows(rows, lanes, itemsize)
        out = _copy_2d(flat.reshape(rows, lanes), tile_rows)
        return out.reshape(orig_shape)

    if n * itemsize <= _SMALL_BYTES:
        # Small, non-lane-aligned input: one full-extent block (legal even
        # when the lane dim is not a multiple of 128).  Perf is irrelevant.
        out = _copy_2d(flat.reshape(1, n), 1)
        return out.reshape(orig_shape)

    # Large and not a multiple of 128 elements (rare): pad to a lane-dense
    # slab, copy, then strip the padding.
    lanes = _LANE_CANDIDATES[0]
    rows = pl.cdiv(n, lanes)
    n_pad = rows * lanes
    flat_p = jnp.pad(flat, (0, n_pad - n))
    tile_rows = _pick_tile_rows(rows, lanes, itemsize)
    out = _copy_2d(flat_p.reshape(rows, lanes), tile_rows)
    return out.reshape(-1)[:n].reshape(orig_shape)


if __name__ == "__main__":
    key = jax.random.PRNGKey(0)
    # Small NCHW-style input consistent with a generic forward(x).
    x = jax.random.normal(key, (2, 4, 16, 16), dtype=jnp.float32)

    y = identity_pallas(x)
    jax.block_until_ready(y)

    assert y.shape == x.shape and y.dtype == x.dtype
    assert bool(jnp.all(y == x))
    print("KERNEL_OK")
</pallas_src>

<mosaic_0001>
module attributes {stable_mosaic.version = 11 : i64} {
  func.func @_identity_kernel(%arg0: i32, %arg1: memref<2x1024xf32, #tpu.memory_space<vmem>>, %arg2: memref<2x1024xf32, #tpu.memory_space<vmem>>) attributes {dimension_semantics = [#tpu.dimension_semantics<parallel>], iteration_bounds = array<i64: 1>, scalar_prefetch = 0 : i64, scratch_operands = 0 : i64, tpu.core_type = #tpu.core_type<tc>, window_params = [{transform_indices = @transform_0, window_bounds = array<i64: 2, 1024>}, {transform_indices = @transform_1, window_bounds = array<i64: 2, 1024>}]} {
    %c0 = arith.constant 0 : index
    %c0_0 = arith.constant 0 : index
    %0 = vector.load %arg1[%c0, %c0_0] : memref<2x1024xf32, #tpu.memory_space<vmem>>, vector<2x1024xf32>
    %c0_1 = arith.constant 0 : index
    %c0_2 = arith.constant 0 : index
    %1 = vector.load %arg2[%c0_1, %c0_2] : memref<2x1024xf32, #tpu.memory_space<vmem>>, vector<2x1024xf32>
    tpu.vector_store %arg2[%c0_1, %c0_2], %0 {strides = array<i32>} : memref<2x1024xf32, #tpu.memory_space<vmem>>, vector<2x1024xf32>,
    return
  }
  func.func @transform_0(%arg0: i32) -> (i32, i32) {
    %c0_i32 = arith.constant 0 : i32
    %c0_i32_0 = arith.constant 0 : i32
    return %arg0, %c0_i32 : i32, i32
  }
  func.func @transform_1(%arg0: i32) -> (i32, i32) {
    %c0_i32 = arith.constant 0 : i32
    %c0_i32_0 = arith.constant 0 : i32
    return %arg0, %c0_i32 : i32, i32
  }
}

</mosaic_0001>

<bundles_post_ra>
// kernel: tpu_custom_call.1
= control target key start
LH: loop header
LB: loop body
LE: loop exit
PB: predicated region body
PF: predicated region fallthrough
CT: control target
= control target key end

     0   :  { %6 = vsyncpa [#allocation3], 0  ;;  %s116_s0 = inlined_call_operand.hbm [shape: f32[2,1024], index: 0, kind: input, shape index: {}, may-alias: {0,1}]   ;;  %s117_s1 = inlined_call_operand.hbm [shape: f32[2,1024], index: 1, kind: output, shape index: {}, may-alias: {0,1}]  }
   0x1   :  { %7 = vsyncpa [#allocation4], 0  ;;  %s13_s8 = sshll.u32 %s116_s0, 4  ;;  %s98_s9 = smov [#allocation2]   ;;  %s14_s8 = int_to_ptr.hbm [resolvable:$true] %s13_s8 }
   0x2   :  { %s15_s10 = sshll.u32 %s98_s9, 4  ;;  %s16_s10 = int_to_ptr.vmem [resolvable:$true] %s15_s10 }
   0x3   :  { %18 = dma.hbm_to_vmem [thread:$0]  %s14_s8, 256, %s16_s10, [#allocation3]  }
   0x4   :  { %94 = dma.done.wait [#allocation3], 256  }
   0x5   :  { %95 = vsyncadd [#allocation3], 4294967040  ;;  %s99_s11 = smov [#allocation5]   ;;  %s34_s15 = sshll.u32 %s117_s1, 4  ;;  %v23_v0 = vld [vmem:[#allocation2] sm:$0xff]  ;;  %v24_v1 = vld [vmem:[#allocation2 + $0x8] sm:$0xff]  ;;  %s35_s15 = int_to_ptr.hbm [resolvable:$true] %s34_s15 }
   0x6   :  { %s32_s12 = sshll.u32 %s99_s11, 4  ;;  %25 = vst [vmem:[#allocation5] sm:$0xff] %v23_v0  ;;  %s33_s12 = int_to_ptr.vmem [resolvable:$true] %s32_s12 }
   0x7   :  { %26 = vst [vmem:[#allocation5 + $0x8] sm:$0xff] %v24_v1 }
   0x8   :  { %37 = dma.vmem_to_hbm [thread:$0]  %s33_s12, 256, %s35_s15, [#allocation4]  }
   0x9   :  { %96 = dma.done.wait [#allocation4], 256  }
   0xa   :  { %97 = vsyncadd [#allocation4], 4294967040 }
   0xb   :  { %42 = vsyncpa [#allocation3], 1 }
   0xc   :  { %43 = vsyncpa [#allocation4], 1 }

</bundles_post_ra>
